<compile_context>
chip_gen: v5e
topology: v5e:2x2
jax: 0.10.0
libtpu: 0.0.40
codegen_flags: <defaults>
</compile_context>

<pallas_src>
import jax
import jax.numpy as jnp
from jax import lax
from jax.experimental import pallas as pl
from jax.experimental.pallas import tpu as pltpu


def _inner_product_decoder_kernel(z_row_ref, z_col_ref, adj_ref):
    # z_row_ref: (TM, D) VMEM tile of lhs rows (batch dim squeezed)
    # z_col_ref: (TN, D) VMEM tile of rhs rows (same array, column-tile view)
    # adj_ref:   (TM, TN) VMEM output tile
    zl = z_row_ref[...]
    zr = z_col_ref[...]
    # Contract both operands on their last dim: (TM, D) x (TN, D) -> (TM, TN).
    # Avoids materializing z.T; MXU accumulates in f32.
    s = lax.dot_general(
        zl, zr,
        dimension_numbers=(((1,), (1,)), ((), ())),
        preferred_element_type=jnp.float32,
    )
    adj_ref[...] = jax.nn.sigmoid(s).astype(adj_ref.dtype)


def _pick_tile(n: int, candidates) -> int:
    """Largest candidate that evenly divides n, else n (full-extent block)."""
    for c in candidates:
        if n % c == 0:
            return c
    return n


def inner_product_decoder(z: jax.Array, dropout: float = 0.0,
                          out_dtype=None) -> jax.Array:
    """Pallas implementation of InnerProductDecoder.forward (eval mode).

    Args:
      z: (B, N, D) float array of latent node embeddings.
      dropout: dropout rate (identity in eval mode; kept for API parity).
      out_dtype: optional output dtype (e.g. jnp.bfloat16 to halve writeback
        traffic). Defaults to z.dtype.

    Returns:
      adj: (B, N, N) array, sigmoid(z @ z^T) per batch element.
    """
    del dropout  # identity in eval mode
    B, N, D = z.shape
    out_dtype = z.dtype if out_dtype is None else out_dtype

    # Lane-dense output tiles: TN multiple of 128 when possible; TM sublane
    # aligned. 512 keeps double-buffered tiles well under the 32 MiB scoped
    # VMEM default on every generation (incl. v7x's 64 MiB physical VMEM).
    TN = _pick_tile(N, (512, 384, 256, 128))
    TM = _pick_tile(N, (512, 256, 128, 64, 32, 16, 8))

    in_bytes = z.dtype.itemsize
    out_bytes = jnp.dtype(out_dtype).itemsize
    cost = pl.CostEstimate(
        flops=2 * B * N * N * D,
        transcendentals=B * N * N,  # sigmoid exp per output element
        bytes_accessed=B * (2 * N * D * in_bytes + N * N * out_bytes),
    )

    return pl.pallas_call(
        _inner_product_decoder_kernel,
        out_shape=jax.ShapeDtypeStruct((B, N, N), out_dtype),
        grid_spec=pltpu.PrefetchScalarGridSpec(
            num_scalar_prefetch=0,
            grid=(B, N // TM, N // TN),
            in_specs=[
                # lhs rows: block (TM, D), batch dim squeezed.
                pl.BlockSpec((None, TM, D), lambda b, i, j: (b, i, 0)),
                # rhs rows (same z, column-tile view): block (TN, D).
                pl.BlockSpec((None, TN, D), lambda b, i, j: (b, j, 0)),
            ],
            out_specs=pl.BlockSpec((None, TM, TN), lambda b, i, j: (b, i, j)),
        ),
        compiler_params=pltpu.CompilerParams(
            # No reduction axis -> every grid axis is independent.
            dimension_semantics=("parallel", "parallel", "parallel"),
        ),
        cost_estimate=cost,
    )(z, z)


if __name__ == "__main__":
    key = jax.random.PRNGKey(0)

    # Small shapes consistent with the module: B=2 graphs, N=8 nodes, D=32.
    B, N, D = 2, 8, 32
    z_small = jax.random.normal(key, (B, N, D), dtype=jnp.float32)
    adj_small = jax.block_until_ready(inner_product_decoder(z_small, dropout=0.5))
    ref_small = jax.nn.sigmoid(jnp.einsum("bnd,bmd->bnm", z_small, z_small))
    assert adj_small.shape == (B, N, N)
    assert jnp.allclose(adj_small, ref_small, atol=1e-5, rtol=1e-5)

    # Also exercise the tiled (lane-dense) path with a larger N.
    B2, N2, D2 = 2, 256, 32
    z_big = jax.random.normal(jax.random.PRNGKey(1), (B2, N2, D2), dtype=jnp.float32)
    adj_big = jax.block_until_ready(inner_product_decoder(z_big))
    ref_big = jax.nn.sigmoid(jnp.einsum("bnd,bmd->bnm", z_big, z_big))
    assert adj_big.shape == (B2, N2, N2)
    assert jnp.allclose(adj_big, ref_big, atol=1e-5, rtol=1e-5)

    print("KERNEL_OK")
</pallas_src>

<mosaic_0001>
module attributes {stable_mosaic.version = 11 : i64} {
  func.func @_inner_product_decoder_kernel(%arg0: i32, %arg1: i32, %arg2: i32, %arg3: memref<1x8x32xf32, #tpu.memory_space<vmem>>, %arg4: memref<1x8x32xf32, #tpu.memory_space<vmem>>, %arg5: memref<1x8x8xf32, #tpu.memory_space<vmem>>) attributes {dimension_semantics = [#tpu.dimension_semantics<parallel>, #tpu.dimension_semantics<parallel>, #tpu.dimension_semantics<parallel>], iteration_bounds = array<i64: 2, 1, 1>, scalar_prefetch = 0 : i64, scratch_operands = 0 : i64, tpu.core_type = #tpu.core_type<tc>, window_params = [{transform_indices = @transform_0, window_bounds = array<i64: 1, 8, 32>}, {transform_indices = @transform_1, window_bounds = array<i64: 1, 8, 32>}, {transform_indices = @transform_2, window_bounds = array<i64: 1, 8, 8>}]} {
    %c0 = arith.constant 0 : index
    %c0_0 = arith.constant 0 : index
    %c0_1 = arith.constant 0 : index
    %0 = vector.load %arg3[%c0, %c0_0, %c0_1] : memref<1x8x32xf32, #tpu.memory_space<vmem>>, vector<1x8x32xf32>
    %1 = vector.shape_cast %0 : vector<1x8x32xf32> to vector<8x32xf32>
    %c0_2 = arith.constant 0 : index
    %c0_3 = arith.constant 0 : index
    %c0_4 = arith.constant 0 : index
    %2 = vector.load %arg4[%c0_2, %c0_3, %c0_4] : memref<1x8x32xf32, #tpu.memory_space<vmem>>, vector<1x8x32xf32>
    %3 = vector.shape_cast %2 : vector<1x8x32xf32> to vector<8x32xf32>
    %cst = arith.constant dense<0.000000e+00> : vector<8x8xf32>
    %4 = tpu.matmul %1, %3, %cst {dimension_numbers = #tpu.dot_dimension_numbers<[1], [1], [0], [0], [0, 0, 1, 0], [], []>} : vector<8x32xf32>, vector<8x32xf32>, vector<8x8xf32> -> vector<8x8xf32>
    %5 = arith.negf %4 : vector<8x8xf32>
    %6 = math.exp %5 : vector<8x8xf32>
    %cst_5 = arith.constant 1.000000e+00 : f32
    %7 = vector.broadcast %cst_5 : f32 to vector<8x8xf32>
    %8 = arith.addf %7, %6 : vector<8x8xf32>
    %9 = arith.divf %7, %8 : vector<8x8xf32>
    %c0_6 = arith.constant 0 : index
    %c0_7 = arith.constant 0 : index
    %c0_8 = arith.constant 0 : index
    %10 = vector.load %arg5[%c0_6, %c0_7, %c0_8] : memref<1x8x8xf32, #tpu.memory_space<vmem>>, vector<1x8x8xf32>
    %11 = vector.shape_cast %10 : vector<1x8x8xf32> to vector<8x8xf32>
    %12 = vector.shape_cast %9 : vector<8x8xf32> to vector<1x8x8xf32>
    tpu.vector_store %arg5[%c0_6, %c0_7, %c0_8], %12 {strides = array<i32>} : memref<1x8x8xf32, #tpu.memory_space<vmem>>, vector<1x8x8xf32>,
    return
  }
  func.func @transform_0(%arg0: i32, %arg1: i32, %arg2: i32) -> (i32, i32, i32) {
    %c0_i32 = arith.constant 0 : i32
    %c0_i32_0 = arith.constant 0 : i32
    return %arg0, %arg1, %c0_i32 : i32, i32, i32
  }
  func.func @transform_1(%arg0: i32, %arg1: i32, %arg2: i32) -> (i32, i32, i32) {
    %c0_i32 = arith.constant 0 : i32
    %c0_i32_0 = arith.constant 0 : i32
    return %arg0, %arg2, %c0_i32 : i32, i32, i32
  }
  func.func @transform_2(%arg0: i32, %arg1: i32, %arg2: i32) -> (i32, i32, i32) {
    %c0_i32 = arith.constant 0 : i32
    return %arg0, %arg1, %arg2 : i32, i32, i32
  }
}

</mosaic_0001>

<bundles_post_ra>
// kernel: tpu_custom_call.1
= control target key start
LH: loop header
LB: loop body
LE: loop exit
PB: predicated region body
PF: predicated region fallthrough
CT: control target
= control target key end

     0   :  { %7 = vsyncpa [#allocation3], 0  ;;  %s791_s0 = inlined_call_operand.hbm [shape: f32[2,8,32], index: 0, kind: input, shape index: {}]   ;;  %s792_s1 = inlined_call_operand.hbm [shape: f32[2,8,32], index: 1, kind: input, shape index: {}]   ;;  %s793_s2 = inlined_call_operand.hbm [shape: f32[2,8,8], index: 2, kind: output, shape index: {}]  }
   0x1   :  { %9 = vsyncpa [#allocation3 + $0x1], 0 }
   0x2   :  { %10 = vsyncpa [#allocation6], 0 }
   0x3   :  { %12 = vsyncpa [#allocation6 + $0x1], 0 }
   0x4   :  { %13 = vsyncpa [#allocation4], 0 }
   0x5   :  { %15 = vsyncpa [#allocation4 + $0x1], 0  ;;  %s658_s9 = smov 0   ;;  %s660_s10 = smov 0  }
   0x6   :  { %s662_s11 = smov 0   ;;  %s664_s12 = smov 0  }
   0x7   :  { %s666_s13 = smov 0   ;;  %s668_s14 = smov 0  }
   0x8 LB: > { %s405_s15 = sadd.s32 4294967295, %s641_s14   ;;  %s406_s16 = sadd.s32 4294967294, %s641_s14   ;;  %s641_s14 = sphi %s668_s14, %s21_s14   ;;  %s637_s13 = sphi %s666_s13, %s802_s13   ;;  %s633_s12 = sphi %s664_s12, %s801_s12   ;;  %s629_s11 = sphi %s662_s11, %s800_s11   ;;  %s625_s10 = sphi %s660_s10, %s799_s10   ;;  %s621_s9 = sphi %s658_s9, %s798_s9  }
   0x9   : > { %s40_s17 = sadd.s32 1, %s637_s13  ;;  %s49_s18 = sadd.s32 1, %s629_s11 }
   0xa   : > { %p42_p0 = scmp.ge.s32.totalorder %s40_s17, 2  ;;  %p56_p1 = scmp.ne.s32.totalorder %s629_s11, %s625_s10 }
   0xb   : > { %p57_p2 = scmp.eq.s32.totalorder %s641_s14, 0  ;;  %p62_p3 = scmp.ne.s32.totalorder %s625_s10, %s621_s9 }
   0xc   : > { %s804_s17 = smov (%p42_p0, %s40_s17), 0  ;;  %p63_p5 = scmp.eq.s32.totalorder %s405_s15, 0 }
   0xd   : > { %p699_p4 = por %p57_p2, %p56_p1  ;;  %s44_s20 = ssub.s32 %s637_s13, %s804_s17 }
   0xe   : > { %p118_p6 = scmp.eq.s32.totalorder %s405_s15, 1  ;;  %p47_p7 = scmp.eq.s32.totalorder %s44_s20, 0 }
   0xf   : > { %p705_p8 = por %p63_p5, %p62_p3  ;;  %p124_p10 = scmp.eq.s32.totalorder %s406_s16, 1 }
  0x10   : > { %p709_p9 = por %p118_p6, %p56_p1  ;;  %p408_p12 = scmp.ge.s32.totalorder %s641_s14, 2 }
  0x11   : > { %s714_s23 = scalar_select %p47_p7, %s629_s11, %s49_s18  }
  0x12   : > { %p716_p11 = por %p124_p10, %p62_p3  ;;  %p441_p13 = scmp.lt.s32.totalorder %s641_s14, 2 }
  0x13   : > { %s144_s25 = sand.u32 1, %s629_s11   ;;  %s410_s27 = sshll.u32 %s637_s13, 3 }
  0x14   : > { %s409_s26 = sshll.u32 %s144_s25, 3  ;;  %s153_s30 = scalar_lea.hbm %s791_s0, %s410_s27 }
  0x15   : > { %s148_s3 = scalar_lea.vmem [#allocation2], %s409_s26  ;;  %s155_s5 = sshll.u32 %s153_s30, 4  ;;  %s156_s5 = int_to_ptr.hbm [resolvable:$true] %s155_s5 }
  0x16   : > { %s157_s4 = sshll.u32 %s148_s3, 4  ;;  %p431_p0 = pnand %p441_p13, %p699_p4  ;;  %s158_s4 = int_to_ptr.vmem [resolvable:$true] %s157_s4 }
  0x17   : > { %p413_p1 = scmp.ge.s32.totalorder %s641_s14, 1  ;;  %p182_p2 = scmp.lt.s32.totalorder %s641_s14, 3 }
  0x18   : > { %s145_s6 = scalar_lea.sflag [#allocation3], %s144_s25  ;;  %s173_s15 = scalar_lea.hbm %s792_s1, %s410_s27 }
  0x19   : > { %433 = dma.hbm_to_vmem [thread:$0]  (!%p431_p0), %s156_s5, 128, %s158_s4, %s145_s6  }
  0x1a   : > { %p183_p3 = pnand %p413_p1, %p182_p2  ;;  %s168_s16 = scalar_lea.vmem [#allocation5], %s409_s26 }
  0x1b   : > { %s177_s18 = sshll.u32 %s168_s16, 4  ;;  %s175_s20 = sshll.u32 %s173_s15, 4  ;;  %s178_s18 = int_to_ptr.vmem [resolvable:$true] %s177_s18  ;;  %s176_s20 = int_to_ptr.hbm [resolvable:$true] %s175_s20 }
  0x1c   : > { %s165_s28 = scalar_lea.sflag [#allocation6], %s144_s25  ;;  %186 = sbr.rel (%p183_p3) target bundleno = 197 (0xc5), region = 28 }
  0x1d   : > { %436 = dma.hbm_to_vmem [thread:$0]  (!%p431_p0), %s176_s20, 128, %s178_s18, %s165_s28  }
  0x1e   : > { %s735_s19 = sand.u32 (!%p183_p3), 1, %s625_s10  }
  0x1f   : > { %s738_s29 = sshll.u32 (!%p183_p3), %s735_s19, 3  ;;  %s189_s30 = scalar_lea.sflag (!%p183_p3), [#allocation3], %s735_s19 }
  0x20   : > { %s192_s3 = scalar_lea.vmem (!%p183_p3), [#allocation2], %s738_s29 }
  0x21   : > { %608 = dma.done.wait (%p705_p8), %s189_s30, 128  }
  0x22   : > { %610 = vsyncadd (%p705_p8), %s189_s30, 4294967168  ;;  %s199_s25 = scalar_lea.sflag [#allocation6], %s735_s19  ;;  %s202_s26 = scalar_lea.vmem [#allocation5], %s738_s29 }
  0x23   : > { %612 = dma.done.wait (%p705_p8), %s199_s25, 128  }
  0x24   : > { %614 = vsyncadd (%p705_p8), %s199_s25, 4294967168  ;;  %vm231_vm0 = vcmask 261120   ;;  %v230_v0 = vld [vmem:[%s202_s26] sm:$0xff]  ;;  %v229_v1 = vld [vmem:[%s192_s3] sm:$0xff]  ;;  %s421_s27 = sshll.u32 %s633_s12, 3  ;;  %s228_s6 = scalar_lea.vmem [#allocation7], %s738_s29 }
  0x25   : > { %417 = vmatpush.xpose.msk.msra.mxu0 %vm231_vm0, %v230_v0  ;;  %s292_s5 = scalar_lea.hbm %s793_s2, %s421_s27  ;;  %s294_s7 = sshll.u32 %s228_s6, 4  ;;  %vm277_vm4 = vcmask 64512   ;;  %s295_s7 = int_to_ptr.vmem [resolvable:$true] %s294_s7 }
  0x26   : > { %s296_s8 = sshll.u32 %s292_s5, 4  ;;  %s280_s12 = scalar_lea.sflag [#allocation4], %s735_s19  ;;  %s297_s8 = int_to_ptr.hbm [resolvable:$true] %s296_s8 }
  0x27   : > { %s569_s15 = sshra.s32 %s297_s8, 4  ;;  %s575_s28 = scalar_lea.hbm %s793_s2, 16  ;;  %s570_s15 = int_to_ptr.hbm [resolvable:$true] %s569_s15 }
  0x28   : > { %418 = vmatmul.msk.f32.vlgmr.msra.gmra.mxu0 %vm231_vm0, %v229_v1  ;;  %s571_s16 = scalar_lea.hbm %s570_s15, 8  ;;  %p576_p7 = scmp.lt.s32.totalorder %s570_s15, %s793_s2 }
  0x29   : > { %p572_p4 = scmp.ne.s32.totalorder %s570_s15, %s571_s16  ;;  %p577_p8 = scmp.lt.s32.totalorder %s575_s28, %s571_s16 }
  0x2b   : > { %p573_p5 = pnand %p572_p4, %p709_p9  ;;  %p578_p10 = por %p577_p8, %p576_p7 }
  0x2d   : > { %p574_p6 = pneg %p573_p5 }
  0x2f   : > { %p579_p13 = pnand %p578_p10, %p574_p6 }
  0xa5   : > { %v255_v2 = vpop.f32.mrf.mxu0 }
  0xa6   : > { %v419_v3 = vmul.f32 -1.442695, %v255_v2 }
  0xa8   : > { %491 = vpow2.f32 %v419_v3 }
  0xae   : > { %v492_v4 = vpop.eup %491 }
  0xaf   : > { %v261_v5 = vadd.f32 1.0, %v492_v4 }
  0xb1   : > { %493 = vrcp.f32 %v261_v5  ;;  %v273_v9 = vand.u32 2147483648, %v261_v5  ;;  %v271_v11 = vand.u32 2147483647, %v261_v5  ;;  %vm267_vm2 = vweird.f32 %v261_v5 }
  0xb3   : > { %v274_v13 = vor.u32 1.1754944e-38, %v273_v9  ;;  %vm272_vm5 = vcmp.eq.f32.partialorder %v271_v11, 8.507059e+37 }
  0xb7   : > { %v494_v6 = vpop.eup %493 }
  0xb8   : > { %v263_v7 = vmul.f32 %v494_v6, %v261_v5  ;;  %vm268_vm1 = vweird.f32 %v494_v6 }
  0xb9   : > { %vm269_vm3 = vmor %vm267_vm2, %vm268_vm1 }
  0xba   : > { %v264_v8 = vsub.f32 1.0, %v263_v7 }
  0xbc   : > { %v265_v10 = vmul.f32 %v494_v6, %v264_v8 }
  0xbe   : > { %v266_v12 = vadd.f32 %v494_v6, %v265_v10 }
  0xc0   : > { %v270_v14 = vsel %vm269_vm3, %v494_v6, %v266_v12 }
  0xc1   : > { %v275_v15 = vsel %vm272_vm5, %v274_v13, %v270_v14 }
  0xc2   : > { %278 = vst.msk [vmem:[%s228_s6] sm:$0xff] %vm277_vm4, %v275_v15 }
  0xc3   : > { %582 = shalt.err (!%p579_p13)
}
  0xc4   : > { %428 = dma.vmem_to_hbm [thread:$0]  (%p709_p9), %s295_s7, 128, %s297_s8, %s280_s12  }
  0xc5 PF: > { %s308_s19 = sand.u32 1, %s621_s9   ;;  %p438_p0 = pnand %p408_p12, %p716_p11 }
  0xc6   : > { %s309_s3 = scalar_lea.sflag [#allocation4], %s308_s19 }
  0xc7   : > { %p439_p1 = pneg %p438_p0 }
  0xc9   : > { %616 = dma.done.wait (%p439_p1), %s309_s3, 128  }
  0xca   : > { %618 = vsyncadd (%p439_p1), %s309_s3, 4294967168  ;;  %s21_s14 = sadd.s32 1, %s641_s14   ;;  %s798_s9 = smov %s625_s10 }
  0xcb   : > { %p18_p2 = scmp.ge.s32.totalorder %s21_s14, 4   ;;  %s799_s10 = smov %s629_s11 }
  0xcc   : > { %s800_s11 = smov %s714_s23  ;;  %s801_s12 = smov %s637_s13 }
  0xcd   : > { %s802_s13 = smov %s804_s17  ;;  %20 = sbr.rel (!%p18_p2) target bundleno = 8 (0x8), region = 86 }
  0xd2   :  { %315 = vsyncpa [#allocation3], 1 }
  0xd3   :  { %317 = vsyncpa [#allocation3 + $0x1], 1 }
  0xd4   :  { %318 = vsyncpa [#allocation6], 1 }
  0xd5   :  { %320 = vsyncpa [#allocation6 + $0x1], 1 }
  0xd6   :  { %321 = vsyncpa [#allocation4], 1 }
  0xd7   :  { %323 = vsyncpa [#allocation4 + $0x1], 1 }

</bundles_post_ra>
